<compile_context>
chip_gen: v7x
topology: tpu7x:2x2x1
jax: 0.10.0
libtpu: 0.0.40
codegen_flags: <defaults>
</compile_context>

<pallas_src>
import jax
import jax.numpy as jnp
from jax.experimental import pallas as pl
from jax.experimental.pallas import tpu as pltpu


def _make_kernel(TB, P, N, F, D):
    """One grid step: TB batch elements — gather personal rows + one dense store."""

    def kernel(idx_ref, k_ref, u_ref, kd_ref, qa_ref, mqa_ref, node_ref, out_ref):
        # idx_ref : SMEM (B*P,) int32           (scalar-prefetched)
        # k/u/kd/qa/mqa_ref : VMEM (TB, P, F)
        # node_ref: VMEM (TB, N, D)
        # out_ref : VMEM (TB, P, 5F + D)
        b0 = pl.program_id(0) * TB
        tiles = []
        for bi in range(TB):                      # static unroll, TB*P kept small
            rows = []
            for p in range(P):
                idx = idx_ref[(b0 + bi) * P + p]                  # SMEM scalar read
                idx = jnp.clip(idx, 0, N - 1)                     # clamp (matches jnp ref)
                rows.append(node_ref[bi, pl.ds(idx, 1), :])       # (1, D) dynamic-row load
            gathered = jnp.concatenate(rows, axis=0)              # (P, D)
            tiles.append(jnp.concatenate(
                [k_ref[bi], u_ref[bi], kd_ref[bi], qa_ref[bi], mqa_ref[bi], gathered],
                axis=-1))                                         # (P, 5F + D)
        # Single unmasked, lane-dense store of the whole output block.
        out_ref[...] = jnp.stack(tiles, axis=0)

    return kernel


def _choose_batch_tile(B, P, N, F, D, itemsize):
    """Largest batch tile that keeps the gather unroll and VMEM footprint bounded
    and divides B (full blocks only, so no padded rows feed garbage indices)."""
    max_rows = 128                                   # bound static unroll of the gather
    tb = max(1, min(B, max_rows // max(P, 1)))

    vmem_budget = 16 * 1024 * 1024                   # conservative (v7x: 64 MiB physical)

    def vmem_bytes(t):                               # double-buffered in/out blocks
        return 2 * itemsize * (5 * t * P * F + t * N * D + t * P * (5 * F + D))

    while tb > 1 and vmem_bytes(tb) > vmem_budget:
        tb -= 1
    while B % tb != 0:
        tb -= 1
    return tb


def workers_state_tracker(known_one_hot, unknown_one_hot, known_differ_one_hot,
                          workers_qa_turn_one_hot, workers_max_qa_turn_one_hot,
                          personal_nodes, final_node_embed):
    """Fused Pallas forward equivalent to WorkersStateTracker.forward."""
    B, P, F = known_one_hot.shape
    _, N, D = final_node_embed.shape
    C = 5 * F + D

    feats = (known_one_hot, unknown_one_hot, known_differ_one_hot,
             workers_qa_turn_one_hot, workers_max_qa_turn_one_hot)
    # Keep original precision end-to-end (no forced f32 widening).
    out_dtype = jnp.result_type(*(f.dtype for f in feats), final_node_embed.dtype)
    feats = tuple(f if f.dtype == out_dtype else f.astype(out_dtype) for f in feats)
    node_emb = (final_node_embed if final_node_embed.dtype == out_dtype
                else final_node_embed.astype(out_dtype))
    idx_flat = personal_nodes.astype(jnp.int32).reshape(B * P)   # 1D -> compact SMEM pad

    TB = _choose_batch_tile(B, P, N, F, D, jnp.dtype(out_dtype).itemsize)
    kernel = _make_kernel(TB, P, N, F, D)

    feat_spec = pl.BlockSpec((TB, P, F), lambda b, idx: (b, 0, 0))
    grid_spec = pltpu.PrefetchScalarGridSpec(
        num_scalar_prefetch=1,                        # personal_nodes -> SMEM
        grid=(B // TB,),
        in_specs=[feat_spec] * 5
                 + [pl.BlockSpec((TB, N, D), lambda b, idx: (b, 0, 0))],
        out_specs=pl.BlockSpec((TB, P, C), lambda b, idx: (b, 0, 0)),
    )

    return pl.pallas_call(
        kernel,
        out_shape=jax.ShapeDtypeStruct((B, P, C), out_dtype),
        grid_spec=grid_spec,
        compiler_params=pltpu.CompilerParams(
            dimension_semantics=("parallel",)),       # independent batch tiles
    )(idx_flat, *feats, node_emb)


# ---------------------------- pure-JAX reference -----------------------------
def workers_state_tracker_ref(k1, k2, k3, k4, k5, personal_nodes, final_node_embed):
    gathered = jax.vmap(lambda emb, idx: emb[idx])(final_node_embed, personal_nodes)
    return jnp.concatenate([k1, k2, k3, k4, k5, gathered], axis=2)


if __name__ == "__main__":
    key = jax.random.PRNGKey(0)
    B, P, N, F = 2, 8, 16, 64   # batch, personal nodes, total graph nodes, feature size
    D = F                        # embedding dim of final_node_embed ( = feature_size )

    ks = jax.random.split(key, 7)

    def rand_one_hot(k):
        return jax.nn.one_hot(
            jax.random.randint(k, (B, P), 0, F), F, dtype=jnp.float32)

    known_one_hot = rand_one_hot(ks[0])
    unknown_one_hot = rand_one_hot(ks[1])
    known_differ_one_hot = rand_one_hot(ks[2])
    workers_qa_turn_one_hot = rand_one_hot(ks[3])
    workers_max_qa_turn_one_hot = rand_one_hot(ks[4])
    personal_nodes = jax.random.randint(ks[5], (B, P), 0, N, dtype=jnp.int32)
    final_node_embed = jax.random.normal(ks[6], (B, N, D), jnp.float32)

    out = workers_state_tracker(
        known_one_hot, unknown_one_hot, known_differ_one_hot,
        workers_qa_turn_one_hot, workers_max_qa_turn_one_hot,
        personal_nodes, final_node_embed)
    out = jax.block_until_ready(out)

    ref = workers_state_tracker_ref(
        known_one_hot, unknown_one_hot, known_differ_one_hot,
        workers_qa_turn_one_hot, workers_max_qa_turn_one_hot,
        personal_nodes, final_node_embed)

    assert out.shape == (B, P, 5 * F + D), out.shape
    assert jnp.allclose(out, ref, rtol=1e-6, atol=1e-6), \
        float(jnp.max(jnp.abs(out - ref)))
    print("KERNEL_OK")
</pallas_src>

<mosaic_0001>
module attributes {stable_mosaic.version = 11 : i64} {
  func.func @kernel(%arg0: i32, %arg1: memref<16xi32, #tpu.memory_space<smem>>, %arg2: memref<2x8x64xf32, #tpu.memory_space<vmem>>, %arg3: memref<2x8x64xf32, #tpu.memory_space<vmem>>, %arg4: memref<2x8x64xf32, #tpu.memory_space<vmem>>, %arg5: memref<2x8x64xf32, #tpu.memory_space<vmem>>, %arg6: memref<2x8x64xf32, #tpu.memory_space<vmem>>, %arg7: memref<2x16x64xf32, #tpu.memory_space<vmem>>, %arg8: memref<2x8x384xf32, #tpu.memory_space<vmem>>) attributes {dimension_semantics = [#tpu.dimension_semantics<parallel>], iteration_bounds = array<i64: 1>, scalar_prefetch = 1 : i64, scratch_operands = 0 : i64, tpu.core_type = #tpu.core_type<tc>, window_params = [{transform_indices = @transform_0, window_bounds = array<i64: 2, 8, 64>}, {transform_indices = @transform_1, window_bounds = array<i64: 2, 8, 64>}, {transform_indices = @transform_2, window_bounds = array<i64: 2, 8, 64>}, {transform_indices = @transform_3, window_bounds = array<i64: 2, 8, 64>}, {transform_indices = @transform_4, window_bounds = array<i64: 2, 8, 64>}, {transform_indices = @transform_5, window_bounds = array<i64: 2, 16, 64>}, {transform_indices = @transform_6, window_bounds = array<i64: 2, 8, 384>}]} {
    %c2_i32 = arith.constant 2 : i32
    %0 = arith.muli %arg0, %c2_i32 : i32
    %c0_i32 = arith.constant 0 : i32
    %1 = arith.addi %0, %c0_i32 : i32
    %c8_i32 = arith.constant 8 : i32
    %2 = arith.muli %1, %c8_i32 : i32
    %c0_i32_0 = arith.constant 0 : i32
    %3 = arith.addi %2, %c0_i32_0 : i32
    %4 = arith.index_cast %3 : i32 to index
    %5 = memref.load %arg1[%4] : memref<16xi32, #tpu.memory_space<smem>>
    %c0_i32_1 = arith.constant 0 : i32
    %c15_i32 = arith.constant 15 : i32
    %6 = arith.maxsi %c0_i32_1, %5 : i32
    %7 = arith.minsi %c15_i32, %6 : i32
    %c0 = arith.constant 0 : index
    %8 = arith.index_cast %7 : i32 to index
    %c0_2 = arith.constant 0 : index
    %9 = vector.load %arg7[%c0, %8, %c0_2] : memref<2x16x64xf32, #tpu.memory_space<vmem>>, vector<1x1x64xf32>
    %10 = vector.shape_cast %9 : vector<1x1x64xf32> to vector<1x64xf32>
    %c0_i32_3 = arith.constant 0 : i32
    %11 = arith.addi %0, %c0_i32_3 : i32
    %c8_i32_4 = arith.constant 8 : i32
    %12 = arith.muli %11, %c8_i32_4 : i32
    %c1_i32 = arith.constant 1 : i32
    %13 = arith.addi %12, %c1_i32 : i32
    %14 = arith.index_cast %13 : i32 to index
    %15 = memref.load %arg1[%14] : memref<16xi32, #tpu.memory_space<smem>>
    %c0_i32_5 = arith.constant 0 : i32
    %c15_i32_6 = arith.constant 15 : i32
    %16 = arith.maxsi %c0_i32_5, %15 : i32
    %17 = arith.minsi %c15_i32_6, %16 : i32
    %c0_7 = arith.constant 0 : index
    %18 = arith.index_cast %17 : i32 to index
    %c0_8 = arith.constant 0 : index
    %19 = vector.load %arg7[%c0_7, %18, %c0_8] : memref<2x16x64xf32, #tpu.memory_space<vmem>>, vector<1x1x64xf32>
    %20 = vector.shape_cast %19 : vector<1x1x64xf32> to vector<1x64xf32>
    %c0_i32_9 = arith.constant 0 : i32
    %21 = arith.addi %0, %c0_i32_9 : i32
    %c8_i32_10 = arith.constant 8 : i32
    %22 = arith.muli %21, %c8_i32_10 : i32
    %c2_i32_11 = arith.constant 2 : i32
    %23 = arith.addi %22, %c2_i32_11 : i32
    %24 = arith.index_cast %23 : i32 to index
    %25 = memref.load %arg1[%24] : memref<16xi32, #tpu.memory_space<smem>>
    %c0_i32_12 = arith.constant 0 : i32
    %c15_i32_13 = arith.constant 15 : i32
    %26 = arith.maxsi %c0_i32_12, %25 : i32
    %27 = arith.minsi %c15_i32_13, %26 : i32
    %c0_14 = arith.constant 0 : index
    %28 = arith.index_cast %27 : i32 to index
    %c0_15 = arith.constant 0 : index
    %29 = vector.load %arg7[%c0_14, %28, %c0_15] : memref<2x16x64xf32, #tpu.memory_space<vmem>>, vector<1x1x64xf32>
    %30 = vector.shape_cast %29 : vector<1x1x64xf32> to vector<1x64xf32>
    %c0_i32_16 = arith.constant 0 : i32
    %31 = arith.addi %0, %c0_i32_16 : i32
    %c8_i32_17 = arith.constant 8 : i32
    %32 = arith.muli %31, %c8_i32_17 : i32
    %c3_i32 = arith.constant 3 : i32
    %33 = arith.addi %32, %c3_i32 : i32
    %34 = arith.index_cast %33 : i32 to index
    %35 = memref.load %arg1[%34] : memref<16xi32, #tpu.memory_space<smem>>
    %c0_i32_18 = arith.constant 0 : i32
    %c15_i32_19 = arith.constant 15 : i32
    %36 = arith.maxsi %c0_i32_18, %35 : i32
    %37 = arith.minsi %c15_i32_19, %36 : i32
    %c0_20 = arith.constant 0 : index
    %38 = arith.index_cast %37 : i32 to index
    %c0_21 = arith.constant 0 : index
    %39 = vector.load %arg7[%c0_20, %38, %c0_21] : memref<2x16x64xf32, #tpu.memory_space<vmem>>, vector<1x1x64xf32>
    %40 = vector.shape_cast %39 : vector<1x1x64xf32> to vector<1x64xf32>
    %c0_i32_22 = arith.constant 0 : i32
    %41 = arith.addi %0, %c0_i32_22 : i32
    %c8_i32_23 = arith.constant 8 : i32
    %42 = arith.muli %41, %c8_i32_23 : i32
    %c4_i32 = arith.constant 4 : i32
    %43 = arith.addi %42, %c4_i32 : i32
    %44 = arith.index_cast %43 : i32 to index
    %45 = memref.load %arg1[%44] : memref<16xi32, #tpu.memory_space<smem>>
    %c0_i32_24 = arith.constant 0 : i32
    %c15_i32_25 = arith.constant 15 : i32
    %46 = arith.maxsi %c0_i32_24, %45 : i32
    %47 = arith.minsi %c15_i32_25, %46 : i32
    %c0_26 = arith.constant 0 : index
    %48 = arith.index_cast %47 : i32 to index
    %c0_27 = arith.constant 0 : index
    %49 = vector.load %arg7[%c0_26, %48, %c0_27] : memref<2x16x64xf32, #tpu.memory_space<vmem>>, vector<1x1x64xf32>
    %50 = vector.shape_cast %49 : vector<1x1x64xf32> to vector<1x64xf32>
    %c0_i32_28 = arith.constant 0 : i32
    %51 = arith.addi %0, %c0_i32_28 : i32
    %c8_i32_29 = arith.constant 8 : i32
    %52 = arith.muli %51, %c8_i32_29 : i32
    %c5_i32 = arith.constant 5 : i32
    %53 = arith.addi %52, %c5_i32 : i32
    %54 = arith.index_cast %53 : i32 to index
    %55 = memref.load %arg1[%54] : memref<16xi32, #tpu.memory_space<smem>>
    %c0_i32_30 = arith.constant 0 : i32
    %c15_i32_31 = arith.constant 15 : i32
    %56 = arith.maxsi %c0_i32_30, %55 : i32
    %57 = arith.minsi %c15_i32_31, %56 : i32
    %c0_32 = arith.constant 0 : index
    %58 = arith.index_cast %57 : i32 to index
    %c0_33 = arith.constant 0 : index
    %59 = vector.load %arg7[%c0_32, %58, %c0_33] : memref<2x16x64xf32, #tpu.memory_space<vmem>>, vector<1x1x64xf32>
    %60 = vector.shape_cast %59 : vector<1x1x64xf32> to vector<1x64xf32>
    %c0_i32_34 = arith.constant 0 : i32
    %61 = arith.addi %0, %c0_i32_34 : i32
    %c8_i32_35 = arith.constant 8 : i32
    %62 = arith.muli %61, %c8_i32_35 : i32
    %c6_i32 = arith.constant 6 : i32
    %63 = arith.addi %62, %c6_i32 : i32
    %64 = arith.index_cast %63 : i32 to index
    %65 = memref.load %arg1[%64] : memref<16xi32, #tpu.memory_space<smem>>
    %c0_i32_36 = arith.constant 0 : i32
    %c15_i32_37 = arith.constant 15 : i32
    %66 = arith.maxsi %c0_i32_36, %65 : i32
    %67 = arith.minsi %c15_i32_37, %66 : i32
    %c0_38 = arith.constant 0 : index
    %68 = arith.index_cast %67 : i32 to index
    %c0_39 = arith.constant 0 : index
    %69 = vector.load %arg7[%c0_38, %68, %c0_39] : memref<2x16x64xf32, #tpu.memory_space<vmem>>, vector<1x1x64xf32>
    %70 = vector.shape_cast %69 : vector<1x1x64xf32> to vector<1x64xf32>
    %c0_i32_40 = arith.constant 0 : i32
    %71 = arith.addi %0, %c0_i32_40 : i32
    %c8_i32_41 = arith.constant 8 : i32
    %72 = arith.muli %71, %c8_i32_41 : i32
    %c7_i32 = arith.constant 7 : i32
    %73 = arith.addi %72, %c7_i32 : i32
    %74 = arith.index_cast %73 : i32 to index
    %75 = memref.load %arg1[%74] : memref<16xi32, #tpu.memory_space<smem>>
    %c0_i32_42 = arith.constant 0 : i32
    %c15_i32_43 = arith.constant 15 : i32
    %76 = arith.maxsi %c0_i32_42, %75 : i32
    %77 = arith.minsi %c15_i32_43, %76 : i32
    %c0_44 = arith.constant 0 : index
    %78 = arith.index_cast %77 : i32 to index
    %c0_45 = arith.constant 0 : index
    %79 = vector.load %arg7[%c0_44, %78, %c0_45] : memref<2x16x64xf32, #tpu.memory_space<vmem>>, vector<1x1x64xf32>
    %80 = vector.shape_cast %79 : vector<1x1x64xf32> to vector<1x64xf32>
    %81 = tpu.concatenate %10, %20, %30, %40, %50, %60, %70, %80 in 0 : vector<1x64xf32>, vector<1x64xf32>, vector<1x64xf32>, vector<1x64xf32>, vector<1x64xf32>, vector<1x64xf32>, vector<1x64xf32>, vector<1x64xf32> -> vector<8x64xf32>
    %c0_46 = arith.constant 0 : index
    %c0_47 = arith.constant 0 : index
    %c0_48 = arith.constant 0 : index
    %82 = vector.load %arg2[%c0_46, %c0_47, %c0_48] : memref<2x8x64xf32, #tpu.memory_space<vmem>>, vector<1x8x64xf32>
    %83 = vector.shape_cast %82 : vector<1x8x64xf32> to vector<8x64xf32>
    %c0_49 = arith.constant 0 : index
    %c0_50 = arith.constant 0 : index
    %c0_51 = arith.constant 0 : index
    %84 = vector.load %arg3[%c0_49, %c0_50, %c0_51] : memref<2x8x64xf32, #tpu.memory_space<vmem>>, vector<1x8x64xf32>
    %85 = vector.shape_cast %84 : vector<1x8x64xf32> to vector<8x64xf32>
    %c0_52 = arith.constant 0 : index
    %c0_53 = arith.constant 0 : index
    %c0_54 = arith.constant 0 : index
    %86 = vector.load %arg4[%c0_52, %c0_53, %c0_54] : memref<2x8x64xf32, #tpu.memory_space<vmem>>, vector<1x8x64xf32>
    %87 = vector.shape_cast %86 : vector<1x8x64xf32> to vector<8x64xf32>
    %c0_55 = arith.constant 0 : index
    %c0_56 = arith.constant 0 : index
    %c0_57 = arith.constant 0 : index
    %88 = vector.load %arg5[%c0_55, %c0_56, %c0_57] : memref<2x8x64xf32, #tpu.memory_space<vmem>>, vector<1x8x64xf32>
    %89 = vector.shape_cast %88 : vector<1x8x64xf32> to vector<8x64xf32>
    %c0_58 = arith.constant 0 : index
    %c0_59 = arith.constant 0 : index
    %c0_60 = arith.constant 0 : index
    %90 = vector.load %arg6[%c0_58, %c0_59, %c0_60] : memref<2x8x64xf32, #tpu.memory_space<vmem>>, vector<1x8x64xf32>
    %91 = vector.shape_cast %90 : vector<1x8x64xf32> to vector<8x64xf32>
    %92 = tpu.concatenate %83, %85, %87, %89, %91, %81 in 1 : vector<8x64xf32>, vector<8x64xf32>, vector<8x64xf32>, vector<8x64xf32>, vector<8x64xf32>, vector<8x64xf32> -> vector<8x384xf32>
    %c1_i32_61 = arith.constant 1 : i32
    %93 = arith.addi %0, %c1_i32_61 : i32
    %c8_i32_62 = arith.constant 8 : i32
    %94 = arith.muli %93, %c8_i32_62 : i32
    %c0_i32_63 = arith.constant 0 : i32
    %95 = arith.addi %94, %c0_i32_63 : i32
    %96 = arith.index_cast %95 : i32 to index
    %97 = memref.load %arg1[%96] : memref<16xi32, #tpu.memory_space<smem>>
    %c0_i32_64 = arith.constant 0 : i32
    %c15_i32_65 = arith.constant 15 : i32
    %98 = arith.maxsi %c0_i32_64, %97 : i32
    %99 = arith.minsi %c15_i32_65, %98 : i32
    %c1 = arith.constant 1 : index
    %100 = arith.index_cast %99 : i32 to index
    %c0_66 = arith.constant 0 : index
    %101 = vector.load %arg7[%c1, %100, %c0_66] : memref<2x16x64xf32, #tpu.memory_space<vmem>>, vector<1x1x64xf32>
    %102 = vector.shape_cast %101 : vector<1x1x64xf32> to vector<1x64xf32>
    %c1_i32_67 = arith.constant 1 : i32
    %103 = arith.addi %0, %c1_i32_67 : i32
    %c8_i32_68 = arith.constant 8 : i32
    %104 = arith.muli %103, %c8_i32_68 : i32
    %c1_i32_69 = arith.constant 1 : i32
    %105 = arith.addi %104, %c1_i32_69 : i32
    %106 = arith.index_cast %105 : i32 to index
    %107 = memref.load %arg1[%106] : memref<16xi32, #tpu.memory_space<smem>>
    %c0_i32_70 = arith.constant 0 : i32
    %c15_i32_71 = arith.constant 15 : i32
    %108 = arith.maxsi %c0_i32_70, %107 : i32
    %109 = arith.minsi %c15_i32_71, %108 : i32
    %c1_72 = arith.constant 1 : index
    %110 = arith.index_cast %109 : i32 to index
    %c0_73 = arith.constant 0 : index
    %111 = vector.load %arg7[%c1_72, %110, %c0_73] : memref<2x16x64xf32, #tpu.memory_space<vmem>>, vector<1x1x64xf32>
    %112 = vector.shape_cast %111 : vector<1x1x64xf32> to vector<1x64xf32>
    %c1_i32_74 = arith.constant 1 : i32
    %113 = arith.addi %0, %c1_i32_74 : i32
    %c8_i32_75 = arith.constant 8 : i32
    %114 = arith.muli %113, %c8_i32_75 : i32
    %c2_i32_76 = arith.constant 2 : i32
    %115 = arith.addi %114, %c2_i32_76 : i32
    %116 = arith.index_cast %115 : i32 to index
    %117 = memref.load %arg1[%116] : memref<16xi32, #tpu.memory_space<smem>>
    %c0_i32_77 = arith.constant 0 : i32
    %c15_i32_78 = arith.constant 15 : i32
    %118 = arith.maxsi %c0_i32_77, %117 : i32
    %119 = arith.minsi %c15_i32_78, %118 : i32
    %c1_79 = arith.constant 1 : index
    %120 = arith.index_cast %119 : i32 to index
    %c0_80 = arith.constant 0 : index
    %121 = vector.load %arg7[%c1_79, %120, %c0_80] : memref<2x16x64xf32, #tpu.memory_space<vmem>>, vector<1x1x64xf32>
    %122 = vector.shape_cast %121 : vector<1x1x64xf32> to vector<1x64xf32>
    %c1_i32_81 = arith.constant 1 : i32
    %123 = arith.addi %0, %c1_i32_81 : i32
    %c8_i32_82 = arith.constant 8 : i32
    %124 = arith.muli %123, %c8_i32_82 : i32
    %c3_i32_83 = arith.constant 3 : i32
    %125 = arith.addi %124, %c3_i32_83 : i32
    %126 = arith.index_cast %125 : i32 to index
    %127 = memref.load %arg1[%126] : memref<16xi32, #tpu.memory_space<smem>>
    %c0_i32_84 = arith.constant 0 : i32
    %c15_i32_85 = arith.constant 15 : i32
    %128 = arith.maxsi %c0_i32_84, %127 : i32
    %129 = arith.minsi %c15_i32_85, %128 : i32
    %c1_86 = arith.constant 1 : index
    %130 = arith.index_cast %129 : i32 to index
    %c0_87 = arith.constant 0 : index
    %131 = vector.load %arg7[%c1_86, %130, %c0_87] : memref<2x16x64xf32, #tpu.memory_space<vmem>>, vector<1x1x64xf32>
    %132 = vector.shape_cast %131 : vector<1x1x64xf32> to vector<1x64xf32>
    %c1_i32_88 = arith.constant 1 : i32
    %133 = arith.addi %0, %c1_i32_88 : i32
    %c8_i32_89 = arith.constant 8 : i32
    %134 = arith.muli %133, %c8_i32_89 : i32
    %c4_i32_90 = arith.constant 4 : i32
    %135 = arith.addi %134, %c4_i32_90 : i32
    %136 = arith.index_cast %135 : i32 to index
    %137 = memref.load %arg1[%136] : memref<16xi32, #tpu.memory_space<smem>>
    %c0_i32_91 = arith.constant 0 : i32
    %c15_i32_92 = arith.constant 15 : i32
    %138 = arith.maxsi %c0_i32_91, %137 : i32
    %139 = arith.minsi %c15_i32_92, %138 : i32
    %c1_93 = arith.constant 1 : index
    %140 = arith.index_cast %139 : i32 to index
    %c0_94 = arith.constant 0 : index
    %141 = vector.load %arg7[%c1_93, %140, %c0_94] : memref<2x16x64xf32, #tpu.memory_space<vmem>>, vector<1x1x64xf32>
    %142 = vector.shape_cast %141 : vector<1x1x64xf32> to vector<1x64xf32>
    %c1_i32_95 = arith.constant 1 : i32
    %143 = arith.addi %0, %c1_i32_95 : i32
    %c8_i32_96 = arith.constant 8 : i32
    %144 = arith.muli %143, %c8_i32_96 : i32
    %c5_i32_97 = arith.constant 5 : i32
    %145 = arith.addi %144, %c5_i32_97 : i32
    %146 = arith.index_cast %145 : i32 to index
    %147 = memref.load %arg1[%146] : memref<16xi32, #tpu.memory_space<smem>>
    %c0_i32_98 = arith.constant 0 : i32
    %c15_i32_99 = arith.constant 15 : i32
    %148 = arith.maxsi %c0_i32_98, %147 : i32
    %149 = arith.minsi %c15_i32_99, %148 : i32
    %c1_100 = arith.constant 1 : index
    %150 = arith.index_cast %149 : i32 to index
    %c0_101 = arith.constant 0 : index
    %151 = vector.load %arg7[%c1_100, %150, %c0_101] : memref<2x16x64xf32, #tpu.memory_space<vmem>>, vector<1x1x64xf32>
    %152 = vector.shape_cast %151 : vector<1x1x64xf32> to vector<1x64xf32>
    %c1_i32_102 = arith.constant 1 : i32
    %153 = arith.addi %0, %c1_i32_102 : i32
    %c8_i32_103 = arith.constant 8 : i32
    %154 = arith.muli %153, %c8_i32_103 : i32
    %c6_i32_104 = arith.constant 6 : i32
    %155 = arith.addi %154, %c6_i32_104 : i32
    %156 = arith.index_cast %155 : i32 to index
    %157 = memref.load %arg1[%156] : memref<16xi32, #tpu.memory_space<smem>>
    %c0_i32_105 = arith.constant 0 : i32
    %c15_i32_106 = arith.constant 15 : i32
    %158 = arith.maxsi %c0_i32_105, %157 : i32
    %159 = arith.minsi %c15_i32_106, %158 : i32
    %c1_107 = arith.constant 1 : index
    %160 = arith.index_cast %159 : i32 to index
    %c0_108 = arith.constant 0 : index
    %161 = vector.load %arg7[%c1_107, %160, %c0_108] : memref<2x16x64xf32, #tpu.memory_space<vmem>>, vector<1x1x64xf32>
    %162 = vector.shape_cast %161 : vector<1x1x64xf32> to vector<1x64xf32>
    %c1_i32_109 = arith.constant 1 : i32
    %163 = arith.addi %0, %c1_i32_109 : i32
    %c8_i32_110 = arith.constant 8 : i32
    %164 = arith.muli %163, %c8_i32_110 : i32
    %c7_i32_111 = arith.constant 7 : i32
    %165 = arith.addi %164, %c7_i32_111 : i32
    %166 = arith.index_cast %165 : i32 to index
    %167 = memref.load %arg1[%166] : memref<16xi32, #tpu.memory_space<smem>>
    %c0_i32_112 = arith.constant 0 : i32
    %c15_i32_113 = arith.constant 15 : i32
    %168 = arith.maxsi %c0_i32_112, %167 : i32
    %169 = arith.minsi %c15_i32_113, %168 : i32
    %c1_114 = arith.constant 1 : index
    %170 = arith.index_cast %169 : i32 to index
    %c0_115 = arith.constant 0 : index
    %171 = vector.load %arg7[%c1_114, %170, %c0_115] : memref<2x16x64xf32, #tpu.memory_space<vmem>>, vector<1x1x64xf32>
    %172 = vector.shape_cast %171 : vector<1x1x64xf32> to vector<1x64xf32>
    %173 = tpu.concatenate %102, %112, %122, %132, %142, %152, %162, %172 in 0 : vector<1x64xf32>, vector<1x64xf32>, vector<1x64xf32>, vector<1x64xf32>, vector<1x64xf32>, vector<1x64xf32>, vector<1x64xf32>, vector<1x64xf32> -> vector<8x64xf32>
    %c1_116 = arith.constant 1 : index
    %c0_117 = arith.constant 0 : index
    %c0_118 = arith.constant 0 : index
    %174 = vector.load %arg2[%c1_116, %c0_117, %c0_118] : memref<2x8x64xf32, #tpu.memory_space<vmem>>, vector<1x8x64xf32>
    %175 = vector.shape_cast %174 : vector<1x8x64xf32> to vector<8x64xf32>
    %c1_119 = arith.constant 1 : index
    %c0_120 = arith.constant 0 : index
    %c0_121 = arith.constant 0 : index
    %176 = vector.load %arg3[%c1_119, %c0_120, %c0_121] : memref<2x8x64xf32, #tpu.memory_space<vmem>>, vector<1x8x64xf32>
    %177 = vector.shape_cast %176 : vector<1x8x64xf32> to vector<8x64xf32>
    %c1_122 = arith.constant 1 : index
    %c0_123 = arith.constant 0 : index
    %c0_124 = arith.constant 0 : index
    %178 = vector.load %arg4[%c1_122, %c0_123, %c0_124] : memref<2x8x64xf32, #tpu.memory_space<vmem>>, vector<1x8x64xf32>
    %179 = vector.shape_cast %178 : vector<1x8x64xf32> to vector<8x64xf32>
    %c1_125 = arith.constant 1 : index
    %c0_126 = arith.constant 0 : index
    %c0_127 = arith.constant 0 : index
    %180 = vector.load %arg5[%c1_125, %c0_126, %c0_127] : memref<2x8x64xf32, #tpu.memory_space<vmem>>, vector<1x8x64xf32>
    %181 = vector.shape_cast %180 : vector<1x8x64xf32> to vector<8x64xf32>
    %c1_128 = arith.constant 1 : index
    %c0_129 = arith.constant 0 : index
    %c0_130 = arith.constant 0 : index
    %182 = vector.load %arg6[%c1_128, %c0_129, %c0_130] : memref<2x8x64xf32, #tpu.memory_space<vmem>>, vector<1x8x64xf32>
    %183 = vector.shape_cast %182 : vector<1x8x64xf32> to vector<8x64xf32>
    %184 = tpu.concatenate %175, %177, %179, %181, %183, %173 in 1 : vector<8x64xf32>, vector<8x64xf32>, vector<8x64xf32>, vector<8x64xf32>, vector<8x64xf32>, vector<8x64xf32> -> vector<8x384xf32>
    %185 = vector.shape_cast %92 : vector<8x384xf32> to vector<1x8x384xf32>
    %186 = vector.shape_cast %184 : vector<8x384xf32> to vector<1x8x384xf32>
    %187 = tpu.concatenate %185, %186 in 0 : vector<1x8x384xf32>, vector<1x8x384xf32> -> vector<2x8x384xf32>
    %c0_131 = arith.constant 0 : index
    %c0_132 = arith.constant 0 : index
    %c0_133 = arith.constant 0 : index
    %188 = vector.load %arg8[%c0_131, %c0_132, %c0_133] : memref<2x8x384xf32, #tpu.memory_space<vmem>>, vector<2x8x384xf32>
    tpu.vector_store %arg8[%c0_131, %c0_132, %c0_133], %187 {strides = array<i32>} : memref<2x8x384xf32, #tpu.memory_space<vmem>>, vector<2x8x384xf32>,
    return
  }
  func.func @transform_0(%arg0: i32, %arg1: memref<16xi32, #tpu.memory_space<smem>>) -> (i32, i32, i32) {
    %c0_i32 = arith.constant 0 : i32
    %c0_i32_0 = arith.constant 0 : i32
    %c0_i32_1 = arith.constant 0 : i32
    return %arg0, %c0_i32, %c0_i32_0 : i32, i32, i32
  }
  func.func @transform_1(%arg0: i32, %arg1: memref<16xi32, #tpu.memory_space<smem>>) -> (i32, i32, i32) {
    %c0_i32 = arith.constant 0 : i32
    %c0_i32_0 = arith.constant 0 : i32
    %c0_i32_1 = arith.constant 0 : i32
    return %arg0, %c0_i32, %c0_i32_0 : i32, i32, i32
  }
  func.func @transform_2(%arg0: i32, %arg1: memref<16xi32, #tpu.memory_space<smem>>) -> (i32, i32, i32) {
    %c0_i32 = arith.constant 0 : i32
    %c0_i32_0 = arith.constant 0 : i32
    %c0_i32_1 = arith.constant 0 : i32
    return %arg0, %c0_i32, %c0_i32_0 : i32, i32, i32
  }
  func.func @transform_3(%arg0: i32, %arg1: memref<16xi32, #tpu.memory_space<smem>>) -> (i32, i32, i32) {
    %c0_i32 = arith.constant 0 : i32
    %c0_i32_0 = arith.constant 0 : i32
    %c0_i32_1 = arith.constant 0 : i32
    return %arg0, %c0_i32, %c0_i32_0 : i32, i32, i32
  }
  func.func @transform_4(%arg0: i32, %arg1: memref<16xi32, #tpu.memory_space<smem>>) -> (i32, i32, i32) {
    %c0_i32 = arith.constant 0 : i32
    %c0_i32_0 = arith.constant 0 : i32
    %c0_i32_1 = arith.constant 0 : i32
    return %arg0, %c0_i32, %c0_i32_0 : i32, i32, i32
  }
  func.func @transform_5(%arg0: i32, %arg1: memref<16xi32, #tpu.memory_space<smem>>) -> (i32, i32, i32) {
    %c0_i32 = arith.constant 0 : i32
    %c0_i32_0 = arith.constant 0 : i32
    %c0_i32_1 = arith.constant 0 : i32
    return %arg0, %c0_i32, %c0_i32_0 : i32, i32, i32
  }
  func.func @transform_6(%arg0: i32, %arg1: memref<16xi32, #tpu.memory_space<smem>>) -> (i32, i32, i32) {
    %c0_i32 = arith.constant 0 : i32
    %c0_i32_0 = arith.constant 0 : i32
    %c0_i32_1 = arith.constant 0 : i32
    return %arg0, %c0_i32, %c0_i32_0 : i32, i32, i32
  }
}

</mosaic_0001>

<bundles_post_ra>
// kernel: tpu_custom_call.1
= control target key start
LH: loop header
LB: loop body
LE: loop exit
PB: predicated region body
PF: predicated region fallthrough
CT: control target
= control target key end

     0   :  { %s945_s0 = inlined_call_operand.hbm [shape: s32[16], index: 0, kind: input, shape index: {}]   ;;  %s946_s1 = inlined_call_operand.hbm [shape: f32[2,8,64], index: 1, kind: input, shape index: {}]   ;;  %s947_s2 = inlined_call_operand.hbm [shape: f32[2,8,64], index: 2, kind: input, shape index: {}]   ;;  %s948_s3 = inlined_call_operand.hbm [shape: f32[2,8,64], index: 3, kind: input, shape index: {}]   ;;  %s949_s4 = inlined_call_operand.hbm [shape: f32[2,8,64], index: 4, kind: input, shape index: {}]   ;;  %s950_s5 = inlined_call_operand.vmem [shape: f32[2,8,64], index: 5, kind: input, shape index: {}]   ;;  %s951_s6 = inlined_call_operand.hbm [shape: f32[2,16,64], index: 6, kind: input, shape index: {}]   ;;  %s952_s7 = inlined_call_operand.hbm [shape: f32[2,8,384], index: 7, kind: output, shape index: {}]  }
   0x1   :  { %s541_s26 = scalar_lea.hbm %s945_s0, 16 }
   0x2   :  { %p542_p0 = scmp.ne.s32.totalorder %s945_s0, %s541_s26  ;;  %p545_p1 = scmp.lt.u32.totalorder %s541_s26, %s945_s0 }
   0x4   :  { %p547_p2 = pnand %p545_p1, %p542_p0 }
   0x6   :  { %550 = shalt.err (!%p547_p2)  }
   0x7   :  { %s693_s8 = smov [#allocation3]  }
   0x8   :  { %13 = dma.hbm_to_smem %s945_s0, 16, %s693_s8, [#allocation2] }
   0x9   :  { %683 = dma.done.wait [#allocation2], 16 }
   0xa   :  { %684 = vsyncadd [#allocation2], 4294967280 }
   0xb   :  { %15 = sfence }
   0xc   :  { %16 = vsyncpa [#allocation5], 0 }
   0xd   :  { %17 = vsyncpa [#allocation8], 0 }
   0xe   :  { %18 = vsyncpa [#allocation11], 0 }
   0xf   :  { %19 = vsyncpa [#allocation6], 0  ;;  %s694_s11 = smov [#allocation7]   ;;  %s695_s13 = smov [#allocation10]  }
  0x10   :  { %s37_s12 = sshll.u32 %s694_s11, 4  ;;  %s61_s14 = sshll.u32 %s695_s13, 4  ;;  %s38_s12 = int_to_ptr.vmem [resolvable:$true] %s37_s12  ;;  %s757_s14 = int_to_ptr.vmem [resolvable:$true] %s61_s14 }
  0x11   :  { %s551_s17 = scalar_lea.hbm %s947_s2, 256 }
  0x12   :  { %p552_p3 = scmp.ne.s32.totalorder %s947_s2, %s551_s17  ;;  %p555_p4 = scmp.lt.u32.totalorder %s551_s17, %s947_s2 }
  0x14   :  { %p557_p5 = pnand %p555_p4, %p552_p3 }
  0x16   :  { %560 = shalt.err (!%p557_p5)
}
  0x17   :  { %s561_s21 = scalar_lea.vmem %s38_s12, 256  ;;  %p566_p7 = scmp.lt.s32.totalorder %s38_s12, %s38_s12 }
  0x18   :  { %p562_p6 = scmp.ne.s32.totalorder %s38_s12, %s561_s21  ;;  %p567_p8 = scmp.lt.s32.totalorder %s561_s21, %s561_s21 }
  0x1a   :  { %p568_p9 = por %p567_p8, %p566_p7 }
  0x1c   :  { %p569_p10 = pnand %p568_p9, %p562_p6 }
  0x1e   :  { %572 = shalt.err (!%p569_p10)
}
  0x1f   :  { %s696_s22 = smov 128   ;;  %s697_s23 = smov 8  }
  0x20   :  { %43 = dma.hbm_to_vmem [thread:$0]  %s947_s2, 256, %s38_s12, [#allocation8], %s696_s22, %s696_s22, %s697_s23  }
  0x21   :  { %s573_s28 = scalar_lea.hbm %s949_s4, 256 }
  0x22   :  { %p574_p11 = scmp.ne.s32.totalorder %s949_s4, %s573_s28  ;;  %p577_p12 = scmp.lt.u32.totalorder %s573_s28, %s949_s4 }
  0x24   :  { %p579_p13 = pnand %p577_p12, %p574_p11 }
  0x26   :  { %582 = shalt.err (!%p579_p13)
}
  0x27   :  { %s583_s10 = scalar_lea.vmem %s757_s14, 256  ;;  %p588_p1 = scmp.lt.s32.totalorder %s757_s14, %s757_s14 }
  0x28   :  { %p584_p0 = scmp.ne.s32.totalorder %s757_s14, %s583_s10  ;;  %p589_p2 = scmp.lt.s32.totalorder %s583_s10, %s583_s10 }
  0x2a   :  { %p590_p3 = por %p589_p2, %p588_p1 }
  0x2c   :  { %p591_p4 = pnand %p590_p3, %p584_p0 }
  0x2e   :  { %594 = shalt.err (!%p591_p4)
}
  0x2f   :  { %67 = dma.hbm_to_vmem [thread:$0]  %s949_s4, 256, %s757_s14, [#allocation11], %s696_s22, %s696_s22, %s697_s23  }
  0x30   :  { %s698_s12 = smov [#allocation4]   ;;  %s699_s15 = smov [#allocation9]  }
  0x31   :  { %s25_s13 = sshll.u32 %s698_s12, 4  ;;  %s49_s16 = sshll.u32 %s699_s15, 4  ;;  %s26_s13 = int_to_ptr.vmem [resolvable:$true] %s25_s13  ;;  %s794_s16 = int_to_ptr.vmem [resolvable:$true] %s49_s16 }
  0x32   :  { %s595_s0 = scalar_lea.hbm %s946_s1, 256 }
  0x33   :  { %p596_p5 = scmp.ne.s32.totalorder %s946_s1, %s595_s0  ;;  %p599_p6 = scmp.lt.u32.totalorder %s595_s0, %s946_s1 }
  0x35   :  { %p601_p7 = pnand %p599_p6, %p596_p5 }
  0x37   :  { %604 = shalt.err (!%p601_p7)
}
  0x38   :  { %s605_s4 = scalar_lea.vmem %s26_s13, 256  ;;  %p610_p9 = scmp.lt.s32.totalorder %s26_s13, %s26_s13 }
  0x39   :  { %p606_p8 = scmp.ne.s32.totalorder %s26_s13, %s605_s4  ;;  %p611_p10 = scmp.lt.s32.totalorder %s605_s4, %s605_s4 }
  0x3b   :  { %p612_p11 = por %p611_p10, %p610_p9 }
  0x3d   :  { %p613_p12 = pnand %p612_p11, %p606_p8 }
  0x3f   :  { %616 = shalt.err (!%p613_p12)
}
  0x40   :  { %31 = dma.hbm_to_vmem [thread:$0]  %s946_s1, 256, %s26_s13, [#allocation5], %s696_s22, %s696_s22, %s697_s23  }
  0x41   :  { %s617_s28 = scalar_lea.hbm %s948_s3, 256 }
  0x42   :  { %p618_p13 = scmp.ne.s32.totalorder %s948_s3, %s617_s28  ;;  %p621_p0 = scmp.lt.u32.totalorder %s617_s28, %s948_s3 }
  0x44   :  { %p623_p1 = pnand %p621_p0, %p618_p13 }
  0x46   :  { %626 = shalt.err (!%p623_p1)
}
  0x47   :  { %s627_s10 = scalar_lea.vmem %s794_s16, 256  ;;  %p632_p3 = scmp.lt.s32.totalorder %s794_s16, %s794_s16 }
  0x48   :  { %p628_p2 = scmp.ne.s32.totalorder %s794_s16, %s627_s10  ;;  %p633_p4 = scmp.lt.s32.totalorder %s627_s10, %s627_s10 }
  0x4a   :  { %p634_p5 = por %p633_p4, %p632_p3 }
  0x4c   :  { %p635_p6 = pnand %p634_p5, %p628_p2 }
  0x4e   :  { %638 = shalt.err (!%p635_p6)
}
  0x4f   :  { %55 = dma.hbm_to_vmem [thread:$0]  %s948_s3, 256, %s794_s16, [#allocation8], %s696_s22, %s696_s22, %s697_s23  }
  0x50   :  { %s700_s11 = smov [#allocation12]   ;;  %s639_s17 = scalar_lea.hbm %s951_s6, 512 }
  0x51   :  { %s75_s12 = sshll.u32 %s700_s11, 4  ;;  %p640_p7 = scmp.ne.s32.totalorder %s951_s6, %s639_s17  ;;  %s76_s12 = int_to_ptr.vmem [resolvable:$true] %s75_s12 }
  0x52   :  { %p643_p8 = scmp.lt.u32.totalorder %s639_s17, %s951_s6 }
  0x54   :  { %p645_p9 = pnand %p643_p8, %p640_p7 }
  0x56   :  { %648 = shalt.err (!%p645_p9)
}
  0x57   :  { %s649_s21 = scalar_lea.vmem %s76_s12, 512  ;;  %p654_p11 = scmp.lt.s32.totalorder %s76_s12, %s76_s12 }
  0x58   :  { %p650_p10 = scmp.ne.s32.totalorder %s76_s12, %s649_s21  ;;  %p655_p12 = scmp.lt.s32.totalorder %s649_s21, %s649_s21 }
  0x5a   :  { %p656_p13 = por %p655_p12, %p654_p11 }
  0x5c   :  { %p657_p0 = pnand %p656_p13, %p650_p10 }
  0x5e   :  { %660 = shalt.err (!%p657_p0)
}
  0x5f   :  { %81 = dma.hbm_to_vmem [thread:$0]  %s951_s6, 512, %s76_s12, [#allocation11], %s696_s22, %s696_s22, %s697_s23  }
  0x60   :  { %685 = dma.done.wait [#allocation5], 256  }
  0x61   :  { %686 = vsyncadd [#allocation5], 4294967040 }
  0x62   :  { %687 = dma.done.wait [#allocation8], 512  }
  0x63   :  { %688 = vsyncadd [#allocation8], 4294966784 }
  0x64   :  { %689 = dma.done.wait [#allocation11], 768  }
  0x65   :  { %690 = vsyncadd [#allocation11], 4294966528  ;;  %s99_s24 = sld [smem:[#allocation3]]  ;;  %s398_s4 = sld [smem:[#allocation3 + $0x1]]  ;;  %v322_v0 = vld [vmem:[#allocation7 + $0x8] sm:$0xff]  ;;  %v198_v1 = vld [vmem:[#allocation7] sm:$0xff] }
  0x66   :  { %s846_s14 = sld [smem:[#allocation3 + $0x2]]  ;;  %s848_s25 = sld [smem:[#allocation3 + $0x3]]  ;;  %v200_v2 = vld [vmem:[#allocation10] sm:$0xff]  ;;  %v326_v3 = vld [vmem:[#allocation10 + $0x8] sm:$0xff]  ;;  %vm183_vm0 = vcmask 1040384   ;;  %vm185_vm1 = vcmask 1041408  }
  0x67   :  { %s850_s26 = sld [smem:[#allocation3 + $0x4]]  ;;  %s852_s27 = sld [smem:[#allocation3 + $0x5]]  ;;  %vm187_vm2 = vcmask 1042432   ;;  %vm189_vm3 = vcmask 1043456   ;;  %vm191_vm4 = vcmask 1044480   ;;  %vm193_vm5 = vcmask 1045504  }
  0x68   :  { %s854_s28 = sld [smem:[#allocation3 + $0x6]]  ;;  %s856_s29 = sld [smem:[#allocation3 + $0x7]]  ;;  %vm195_vm6 = vcmask 1046528   ;;  %vm214_vm7 = vcmask 523264   ;;  %v320_v48 = vld [vmem:[#allocation4 + $0x8] sm:$0xff]  ;;  %v197_v49 = vld [vmem:[#allocation4] sm:$0xff] }
  0x69   :  { %s858_s6 = sld [smem:[#allocation3 + $0x8]]  ;;  %s860_s22 = sld [smem:[#allocation3 + $0x9]]  ;;  %v199_v54 = vld [vmem:[#allocation9] sm:$0xff]  ;;  %v324_v57 = vld [vmem:[#allocation9 + $0x8] sm:$0xff]  ;;  %v201_v60 = vld [vmem:[%s950_s5] sm:$0xff] }
  0x6a   :  { %s862_s23 = sld [smem:[#allocation3 + $0xa]]  ;;  %s864_s30 = sld [smem:[#allocation3 + $0xb]]  ;;  %v496_v63 = vld [vmem:[%s950_s5 + $0x8] sm:$0xff] }
  0x6b   :  { %p100_p1 = scmp.gt.s32.totalorder %s99_s24, 0  ;;  %p393_p2 = scmp.lt.s32.totalorder %s99_s24, 15 }
  0x6c   :  { %s701_s8 = smov 64   ;;  %p108_p3 = scmp.gt.s32.totalorder %s398_s4, 0 }
  0x6d   :  { %330 = vrot.lane.b32.xlu1 %v322_v0, %s701_s8  ;;  %203 = vrot.lane.b32.xlu0 %v198_v1, %s701_s8  ;;  %p399_p4 = scmp.lt.s32.totalorder %s398_s4, 15  ;;  %s954_s24 = smov (!%p100_p1, %s99_s24), 0 }
  0x6e   :  { %s956_s4 = smov (!%p108_p3, %s398_s4), 0  ;;  %s958_s24 = smov (!%p393_p2, %s954_s24), 15 }
  0x6f   :  { %s960_s4 = smov (!%p399_p4, %s956_s4), 15  ;;  %p116_p5 = scmp.gt.s32.totalorder %s846_s14, 0 }
  0x70   :  { %p405_p6 = scmp.lt.s32.totalorder %s846_s14, 15  ;;  %s112_s9 = scalar_lea.vmem [#allocation12], %s960_s4 }
  0x71   :  { %207 = vrot.lane.b32.xlu0 %v200_v2, %s701_s8  ;;  %v113_v4 = vld [vmem:[%s112_s9] sm:$0x1]  ;;  %s962_s14 = smov (!%p116_p5, %s846_s14), 0  ;;  %p124_p7 = scmp.gt.s32.totalorder %s848_s25, 0 }
  0x72   :  { %p411_p8 = scmp.lt.s32.totalorder %s848_s25, 15  ;;  %s964_s14 = smov (!%p405_p6, %s962_s14), 15  ;;  %v163_v5 = vrot.slane %v113_v4, 7 }
  0x73   :  { %s966_s25 = smov (!%p124_p7, %s848_s25), 0  ;;  %s104_s10 = scalar_lea.vmem [#allocation12], %s958_s24 }
  0x74   :  { %v105_v6 = vld [vmem:[%s104_s10] sm:$0x1]  ;;  %p132_p9 = scmp.gt.s32.totalorder %s850_s26, 0  ;;  %s120_s1 = scalar_lea.vmem [#allocation12], %s964_s14 }
  0x75   :  { %334 = vrot.lane.b32.xlu0 %v326_v3, %s701_s8  ;;  %v121_v7 = vld [vmem:[%s120_s1] sm:$0x1]  ;;  %s968_s25 = smov (!%p411_p8, %s966_s25), 15  ;;  %p417_p10 = scmp.lt.s32.totalorder %s850_s26, 15  ;;  %v184_v9 = vsel %vm183_vm0, %v105_v6, %v163_v5 }
  0x76   :  { %s133_s2 = scalar_select %p132_p9, %s850_s26, 0  ;;  %v166_v8 = vrot.slane %v121_v7, 6 }
  0x77   :  { %s128_s11 = scalar_lea.vmem [#allocation12], %s968_s25  ;;  %p140_p11 = scmp.gt.s32.totalorder %s852_s27, 0 }
  0x78   :  { %v129_v10 = vld [vmem:[%s128_s11] sm:$0x1]  ;;  %p423_p12 = scmp.lt.s32.totalorder %s852_s27, 15  ;;  %s970_s2 = smov (!%p417_p10, %s133_s2), 15  ;;  %v186_v12 = vsel %vm185_vm1, %v184_v9, %v166_v8 }
  0x79   :  { %v169_v11 = vrot.slane %v129_v10, 5  ;;  %s972_s27 = smov (!%p140_p11, %s852_s27), 0  ;;  %p148_p13 = scmp.gt.s32.totalorder %s854_s28, 0 }
  0x7a   :  { %s136_s12 = scalar_lea.vmem [#allocation12], %s970_s2  ;;  %s974_s27 = smov (!%p423_p12, %s972_s27), 15 }
  0x7b   :  { %v137_v13 = vld [vmem:[%s136_s12] sm:$0x1]  ;;  %s149_s13 = scalar_select %p148_p13, %s854_s28, 0  ;;  %v188_v15 = vsel %vm187_vm2, %v186_v12, %v169_v11 }
  0x7c   :  { %v172_v14 = vrot.slane %v137_v13, 4  ;;  %p429_p0 = scmp.lt.s32.totalorder %s854_s28, 15  ;;  %s144_s15 = scalar_lea.vmem [#allocation12], %s974_s27 }
  0x7d   :  { %v145_v16 = vld [vmem:[%s144_s15] sm:$0x1]  ;;  %p156_p1 = scmp.gt.s32.totalorder %s856_s29, 0  ;;  %p435_p2 = scmp.lt.s32.totalorder %s856_s29, 15 }
  0x7e   :  { %s976_s13 = smov (!%p429_p0, %s149_s13), 15  ;;  %v175_v17 = vrot.slane %v145_v16, 3  ;;  %v190_v18 = vsel %vm189_vm3, %v188_v15, %v172_v14  ;;  %p221_p3 = scmp.gt.s32.totalorder %s858_s6, 0 }
  0x7f   :  { %s978_s29 = smov (!%p156_p1, %s856_s29), 0  ;;  %s152_s17 = scalar_lea.vmem [#allocation12], %s976_s13 }
  0x80   :  { %v153_v19 = vld [vmem:[%s152_s17] sm:$0x1]  ;;  %s980_s29 = smov (!%p435_p2, %s978_s29), 15  ;;  %v192_v20 = vsel %vm191_vm4, %v190_v18, %v175_v17  ;;  %p441_p4 = scmp.lt.s32.totalorder %s858_s6, 15 }
  0x81   :  { %v178_v21 = vrot.slane %v153_v19, 2  ;;  %s222_s18 = scalar_select %p221_p3, %s858_s6, 0 }
  0x82   :  { %s160_s0 = scalar_lea.vmem [#allocation12], %s980_s29  ;;  %p230_p5 = scmp.gt.s32.totalorder %s860_s22, 0 }
  0x83   :  { %v161_v22 = vld [vmem:[%s160_s0] sm:$0x1]  ;;  %v194_v23 = vsel %vm193_vm5, %v192_v20, %v178_v21  ;;  %p448_p6 = scmp.lt.s32.totalorder %s860_s22, 15  ;;  %s982_s18 = smov (!%p441_p4, %s222_s18), 15 }
  0x84   :  { %v181_v24 = vrot.slane %v161_v22, 1  ;;  %s984_s22 = smov (!%p230_p5, %s860_s22), 0  ;;  %p239_p7 = scmp.gt.s32.totalorder %s862_s23, 0 }
  0x85   :  { %s986_s22 = smov (!%p448_p6, %s984_s22), 15  ;;  %p455_p8 = scmp.lt.s32.totalorder %s862_s23, 15 }
  0x86   :  { %v196_v25 = vsel %vm195_vm6, %v194_v23, %v181_v24  ;;  %s240_s19 = scalar_select %p239_p7, %s862_s23, 0 }
  0x87   :  { %211 = vrot.lane.b32.xlu1 %v196_v25, %s701_s8  ;;  %p248_p9 = scmp.gt.s32.totalorder %s864_s30, 0  ;;  %p462_p10 = scmp.lt.s32.totalorder %s864_s30, 15 }
  0x88   :  { %s988_s19 = smov (!%p455_p8, %s240_s19), 15  ;;  %s468_s20 = sld [smem:[#allocation3 + $0xc]] }
  0x89   :  { %s990_s30 = smov (!%p248_p9, %s864_s30), 0  ;;  %s379_s21 = scalar_lea.vmem [#allocation12], %s986_s22 }
  0x8a   :  { %v453_v26 = vld [vmem:[%s379_s21 + $0x10] sm:$0x1]  ;;  %s992_s30 = smov (!%p462_p10, %s990_s30), 15  ;;  %s475_s3 = sld [smem:[#allocation3 + $0xd]] }
  0x8b   :  { %s381_s16 = scalar_lea.vmem [#allocation12], %s988_s19  ;;  %s908_s24 = sld [smem:[#allocation3 + $0xe]]  ;;  %v292_v28 = vrot.slane %v453_v26, 7 }
  0x8c   :  { %v460_v27 = vld [vmem:[%s381_s16 + $0x10] sm:$0x1]  ;;  %s377_s4 = scalar_lea.vmem [#allocation12], %s982_s18  ;;  %s383_s14 = scalar_lea.vmem [#allocation12], %s992_s30 }
  0x8d   :  { %v446_v29 = vld [vmem:[%s377_s4 + $0x10] sm:$0x1]  ;;  %s489_s25 = sld [smem:[#allocation3 + $0xf]]  ;;  %v295_v31 = vrot.slane %v460_v27, 6  ;;  %s702_s30 = smov [#allocation13]  }
  0x8e   :  { %p257_p11 = scmp.gt.s32.totalorder %s468_s20, 0  ;;  %p469_p12 = scmp.lt.s32.totalorder %s468_s20, 15  ;;  %v467_v30 = vld [vmem:[%s383_s14 + $0x10] sm:$0x1]  ;;  %v312_v32 = vsel %vm183_vm0, %v446_v29, %v292_v28 }
  0x8f   :  { %v298_v33 = vrot.slane %v467_v30, 5  ;;  %v313_v34 = vsel %vm185_vm1, %v312_v32, %v295_v31 }
  0x90   :  { %s994_s20 = smov (!%p257_p11, %s468_s20), 0  ;;  %p266_p13 = scmp.gt.s32.totalorder %s475_s3, 0 }
  0x91   :  { %p476_p0 = scmp.lt.s32.totalorder %s475_s3, 15  ;;  %s996_s20 = smov (!%p469_p12, %s994_s20), 15  ;;  %v314_v37 = vsel %vm187_vm2, %v313_v34, %v298_v33 }
  0x92   :  { %s998_s3 = smov (!%p266_p13, %s475_s3), 0  ;;  %p275_p1 = scmp.gt.s32.totalorder %s908_s24, 0 }
  0x93   :  { %s385_s26 = scalar_lea.vmem [#allocation12], %s996_s20  ;;  %s1000_s3 = smov (!%p476_p0, %s998_s3), 15 }
  0x94   :  { %v474_v35 = vld [vmem:[%s385_s26 + $0x10] sm:$0x1]  ;;  %s276_s27 = scalar_select %p275_p1, %s908_s24, 0 }
  0x95   :  { %v301_v36 = vrot.slane %v474_v35, 4  ;;  %p483_p2 = scmp.lt.s32.totalorder %s908_s24, 15  ;;  %s387_s28 = scalar_lea.vmem [#allocation12], %s1000_s3 }
  0x96   :  { %v481_v38 = vld [vmem:[%s387_s28 + $0x10] sm:$0x1]  ;;  %p284_p3 = scmp.gt.s32.totalorder %s489_s25, 0  ;;  %p490_p4 = scmp.lt.s32.totalorder %s489_s25, 15 }
  0x97   :  { %s1002_s27 = smov (!%p483_p2, %s276_s27), 15  ;;  %v304_v39 = vrot.slane %v481_v38, 3  ;;  %v315_v40 = vsel %vm189_vm3, %v314_v37, %v301_v36 }
  0x98   :  { %s1004_s25 = smov (!%p284_p3, %s489_s25), 0  ;;  %s389_s29 = scalar_lea.vmem [#allocation12], %s1002_s27 }
  0x99   :  { %v488_v41 = vld [vmem:[%s389_s29 + $0x10] sm:$0x1]  ;;  %s1006_s25 = smov (!%p490_p4, %s1004_s25), 15  ;;  %v316_v42 = vsel %vm191_vm4, %v315_v40, %v304_v39 }
  0x9a   :  { %v307_v43 = vrot.slane %v488_v41, 2  ;;  %s391_s6 = scalar_lea.vmem [#allocation12], %s1006_s25 }
  0x9b   :  { %v495_v44 = vld [vmem:[%s391_s6 + $0x10] sm:$0x1] }
  0x9c   :  { %v317_v45 = vsel %vm193_vm5, %v316_v42, %v307_v43  ;;  %v310_v46 = vrot.slane %v495_v44, 1 }
  0x9e   :  { %v318_v47 = vsel %vm195_vm6, %v317_v45, %v310_v46 }
  0x9f   :  { %338 = vrot.lane.b32.xlu1 %v318_v47, %s701_s8  ;;  %s355_s8 = sshll.u32 %s702_s30, 4  ;;  %s356_s8 = int_to_ptr.vmem [resolvable:$true] %s355_s8 }
  0xa0   :  { %s661_s1 = scalar_lea.vmem %s356_s8, 768  ;;  %p666_p6 = scmp.lt.s32.totalorder %s356_s8, %s356_s8 }
  0xa1   :  { %p662_p5 = scmp.ne.s32.totalorder %s356_s8, %s661_s1  ;;  %p667_p7 = scmp.lt.s32.totalorder %s661_s1, %s661_s1 }
  0xa3   :  { %p668_p8 = por %p667_p7, %p666_p6 }
  0xa5   :  { %p669_p9 = pnand %p668_p8, %p662_p5 }
  0xdf   :  { %v331_v50 = vpop.permute.xlu1 %330  ;;  %v204_v51 = vpop.permute.xlu0 %203 }
  0xe0   :  { %v341_v52 = vsel %vm214_vm7, %v320_v48, %v331_v50  ;;  %v215_v53 = vsel %vm214_vm7, %v197_v49, %v204_v51 }
  0xe1   :  { %347 = vst [vmem:[#allocation13 + $0x18] sm:$0xff] %v341_v52  ;;  %344 = vst [vmem:[#allocation13] sm:$0xff] %v215_v53 }
  0xe3   :  { %v208_v55 = vpop.permute.xlu0 %207 }
  0xe4   :  { %v216_v56 = vsel %vm214_vm7, %v199_v54, %v208_v55 }
  0xe5   :  { %345 = vst [vmem:[#allocation13 + $0x8] sm:$0xff] %v216_v56 }
  0xe7   :  { %v335_v58 = vpop.permute.xlu0 %334 }
  0xe8   :  { %v342_v59 = vsel %vm214_vm7, %v324_v57, %v335_v58 }
  0xe9   :  { %348 = vst [vmem:[#allocation13 + $0x20] sm:$0xff] %v342_v59 }
  0xf9   :  { %v212_v61 = vpop.permute.xlu1 %211 }
  0xfa   :  { %v217_v62 = vsel %vm214_vm7, %v201_v60, %v212_v61 }
  0xfb   :  { %346 = vst [vmem:[#allocation13 + $0x10] sm:$0xff] %v217_v62 }
 0x111   :  { %v339_v0 = vpop.permute.xlu1 %338 }
 0x112   :  { %v343_v1 = vsel %vm214_vm7, %v496_v63, %v339_v0 }
 0x113   :  { %349 = vst [vmem:[#allocation13 + $0x28] sm:$0xff] %v343_v1 }
 0x114   :  { %672 = shalt.err (!%p669_p9)
}
 0x115   :  { %s673_s12 = scalar_lea.hbm %s952_s7, 768 }
 0x116   :  { %p674_p10 = scmp.ne.s32.totalorder %s952_s7, %s673_s12  ;;  %p677_p11 = scmp.lt.u32.totalorder %s673_s12, %s952_s7 }
 0x118   :  { %p679_p12 = pnand %p677_p11, %p674_p10 }
 0x11a   :  { %682 = shalt.err (!%p679_p12)
}
 0x11b   :  { %s703_s18 = smov 384   ;;  %s704_s0 = smov 24  }
 0x11c   :  { %361 = dma.vmem_to_hbm [thread:$0]  %s356_s8, 768, %s952_s7, [#allocation6], %s703_s18, %s703_s18, %s704_s0  }
 0x11d   :  { %691 = dma.done.wait [#allocation6], 768  }
 0x11e   :  { %692 = vsyncadd [#allocation6], 4294966528 }
 0x11f   :  { %365 = vsyncpa [#allocation5], 1 }
 0x120   :  { %366 = vsyncpa [#allocation8], 1 }
 0x121   :  { %367 = vsyncpa [#allocation11], 1 }
 0x122   :  { %368 = vsyncpa [#allocation6], 1 }

</bundles_post_ra>
